<compile_context>
chip_gen: v5e
topology: v5e:2x2
jax: 0.10.0
libtpu: 0.0.40
codegen_flags: <defaults>
</compile_context>

<pallas_src>
import functools

import jax
import jax.numpy as jnp
from jax import lax
from jax.experimental import pallas as pl
from jax.experimental.pallas import tpu as pltpu

LANE = 128


def _round_up(x, m):
    return ((x + m - 1) // m) * m


def _pick_tile(total, candidates):
    for c in candidates:
        if total % c == 0:
            return c
    return total


def _vmem_budget_bytes():
    """Generation-aware scoped-VMEM budget (v5e/v6e: 128 MiB phys, v7x: 64 MiB)."""
    cap = 64 * 1024 * 1024
    try:
        info = pltpu.get_tpu_info()
        cap = int(getattr(info, "vmem_capacity_bytes", cap))
    except Exception:
        pass
    # 25% headroom for compiler-internal scratch, never above 100 MiB.
    return max(32 * 1024 * 1024, min(int(cap * 0.75), 100 * 1024 * 1024))


_VMEM_LIMIT = _vmem_budget_bytes()


# --------------------------------------------------------------------------
# Kernel 1: feature transform  XW = X @ W   (bf16 inputs, f32 MXU accumulate)
# --------------------------------------------------------------------------
def _xw_kernel(x_ref, w_ref, o_ref):
    # Inputs are already bf16 + lane-padded in the wrapper -> no in-kernel casts.
    o_ref[...] = jnp.dot(x_ref[...], w_ref[...],
                         preferred_element_type=jnp.float32).astype(jnp.bfloat16)


def feature_transform(x_bf16, w_bf16):
    rows, feat = x_bf16.shape
    out_pad = w_bf16.shape[1]
    tr = _pick_tile(rows, (1024, 512, 256, 128))
    return pl.pallas_call(
        _xw_kernel,
        out_shape=jax.ShapeDtypeStruct((rows, out_pad), jnp.bfloat16),
        grid_spec=pltpu.PrefetchScalarGridSpec(
            num_scalar_prefetch=0,
            grid=(rows // tr,),
            in_specs=[
                pl.BlockSpec((tr, feat), lambda i: (i, 0)),
                pl.BlockSpec((feat, out_pad), lambda i: (0, 0)),  # resident W
            ],
            out_specs=pl.BlockSpec((tr, out_pad), lambda i: (i, 0)),
        ),
        compiler_params=pltpu.CompilerParams(
            dimension_semantics=("parallel",),
            vmem_limit_bytes=_VMEM_LIMIT),
        cost_estimate=pl.CostEstimate(
            flops=2 * rows * feat * out_pad,
            transcendentals=0,
            bytes_accessed=2 * rows * feat + 2 * feat * out_pad
            + 2 * rows * out_pad),
    )(x_bf16, w_bf16)


# --------------------------------------------------------------------------
# Kernel 2: mean aggregation + bias + ReLU (+ masked log_softmax)
#   grid = (dst_pad // tm, src_pad // tk); reduction over src tiles.
#   The f32 output block is resident across k and used as the accumulator.
# --------------------------------------------------------------------------
def _agg_kernel(a_ref, xw_ref, inv_deg_ref, b_ref, o_ref,
                *, tk, out_valid, log_softmax, xw_resident):
    k = pl.program_id(1)

    @pl.when(k == 0)
    def _():
        o_ref[...] = jnp.zeros_like(o_ref)

    if xw_resident:
        # Whole XW lives in VMEM; slice the current reduction panel.
        start = pl.multiple_of(k * tk, tk)
        xw = xw_ref[pl.ds(start, tk), :]
    else:
        xw = xw_ref[...]

    # (tm, tk) bf16 @ (tk, out_pad) bf16 -> accumulate into resident f32 out.
    o_ref[...] += jnp.dot(a_ref[...], xw, preferred_element_type=jnp.float32)

    @pl.when(k == pl.num_programs(1) - 1)
    def _():
        h = o_ref[...] * inv_deg_ref[...] + b_ref[...]   # mean + bias (f32)
        h = jnp.maximum(h, 0.0)                          # F.relu (both layers, per spec)
        if log_softmax:
            cols = lax.broadcasted_iota(jnp.int32, h.shape, 1)
            h = jnp.where(cols < out_valid, h, -jnp.inf)  # mask lane padding
            m = jnp.max(h, axis=1, keepdims=True)
            lse = jnp.log(jnp.sum(jnp.exp(h - m), axis=1, keepdims=True)) + m
            h = h - lse                                   # F.log_softmax
        o_ref[...] = h


def sage_aggregate(a01, xw, inv_deg, b_pad, *, out_valid, log_softmax,
                   tm, tk, xw_resident):
    dst_pad, src_pad = a01.shape
    out_pad = xw.shape[1]
    assert dst_pad % tm == 0 and src_pad % tk == 0

    if xw_resident:
        xw_spec = pl.BlockSpec((src_pad, out_pad), lambda i, k: (0, 0))
        xw_bytes = src_pad * out_pad * 2                       # single read
    else:
        xw_spec = pl.BlockSpec((tk, out_pad), lambda i, k: (k, 0))
        xw_bytes = (dst_pad // tm) * src_pad * out_pad * 2     # re-read per dst tile

    kernel = functools.partial(_agg_kernel, tk=tk, out_valid=out_valid,
                               log_softmax=log_softmax, xw_resident=xw_resident)
    n_exp = dst_pad * out_pad if log_softmax else 0
    # TODO(synk): consider pipeline_mode=pl.Buffered(3) on the A spec if DMA
    # is still exposed after tile enlargement.
    return pl.pallas_call(
        kernel,
        out_shape=jax.ShapeDtypeStruct((dst_pad, out_pad), jnp.float32),
        grid_spec=pltpu.PrefetchScalarGridSpec(
            num_scalar_prefetch=0,
            grid=(dst_pad // tm, src_pad // tk),
            in_specs=[
                pl.BlockSpec((tm, tk), lambda i, k: (i, k)),      # A stream (bf16)
                xw_spec,                                          # XW (resident/stream)
                pl.BlockSpec((tm, 1), lambda i, k: (i, 0)),       # 1/deg
                pl.BlockSpec((1, out_pad), lambda i, k: (0, 0)),  # bias (resident)
            ],
            out_specs=pl.BlockSpec((tm, out_pad), lambda i, k: (i, 0)),
        ),
        compiler_params=pltpu.CompilerParams(
            dimension_semantics=("parallel", "arbitrary"),
            vmem_limit_bytes=_VMEM_LIMIT),
        cost_estimate=pl.CostEstimate(
            flops=2 * dst_pad * src_pad * out_pad,
            transcendentals=n_exp,
            bytes_accessed=dst_pad * src_pad * 2 + xw_bytes
            + dst_pad * 4 + out_pad * 4 + dst_pad * out_pad * 4),
    )(a01, xw, inv_deg, b_pad)


# --------------------------------------------------------------------------
# Tile planning (generation-aware, VMEM-budget driven)
# --------------------------------------------------------------------------
def _agg_vmem_bytes(tm, tk, src_pad, out_pad, xw_resident):
    a_buf = 2 * tm * tk * 2                 # double-buffered bf16 A tiles
    out_buf = 2 * tm * out_pad * 4          # f32 output block (accumulator)
    deg_buf = 2 * tm * 4
    bias_buf = 2 * out_pad * 4
    xw_buf = (src_pad * out_pad * 2 if xw_resident else 2 * tk * out_pad * 2)
    return a_buf + out_buf + deg_buf + bias_buf + xw_buf


def _choose_agg_plan(dst, src, out_pad):
    usable = int(_VMEM_LIMIT * 0.8)         # slack inside the scoped budget

    dst_r = _round_up(dst, 16)              # bf16 vregs pack 16 sublanes
    tm = min(1024, dst_r)
    # v7x has 2 TensorCores: keep >= 2 parallel dst tiles when dst is big.
    if dst_r >= 512:
        tm = min(tm, _round_up((dst_r + 1) // 2, 16))

    src_r = _round_up(src, LANE)
    tk = LANE
    for cand in (2048, 1024, 512, 256):
        if cand <= src_r:
            tk = cand
            break

    # Shrink until the streamed-XW (worst case) plan fits the budget.
    while _agg_vmem_bytes(tm, tk, _round_up(src, tk), out_pad, False) > usable:
        if tk > 256:
            tk //= 2
        elif tm > 16:
            tm = max(16, _round_up(tm // 2, 16))
        else:
            break

    src_pad = _round_up(src, tk)
    xw_resident = _agg_vmem_bytes(tm, tk, src_pad, out_pad, True) <= usable
    return tm, tk, src_pad, xw_resident


# --------------------------------------------------------------------------
# One SAGEConv layer (mean aggregation, lin_l only since x_target is None)
# --------------------------------------------------------------------------
def sage_layer(edge_index, size, h, w, b, *, log_softmax=False):
    src, dst = int(size[0]), int(size[1])
    in_c = h.shape[1]
    out_c = w.shape[1]
    in_pad = _round_up(in_c, LANE)
    out_pad = _round_up(out_c, LANE)

    tm, tk, src_pad, xw_resident = _choose_agg_plan(dst, src, out_pad)
    dst_pad = _round_up(dst, tm)

    # ---- plain-JAX glue: O(E) degree + bf16 adjacency (no f32 round-trip) ----
    # TODO(synk): replace the dense adjacency with CSR neighbor offsets +
    # scalar-prefetch sparse gather (PrefetchScalarGridSpec / make_async_copy)
    # to avoid O(dst*src) HBM traffic at full Reddit scale.
    s_idx, d_idx = edge_index[0], edge_index[1]
    deg = jnp.bincount(d_idx, length=dst_pad).astype(jnp.float32)[:, None]
    inv_deg = 1.0 / jnp.maximum(deg, 1.0)     # padded rows: deg=0 -> 1 (sliced away)
    # bf16 counts are exact up to 256 parallel edges per (dst, src) pair.
    a01 = jnp.zeros((dst_pad, src_pad), jnp.bfloat16).at[d_idx, s_idx].add(1.0)
    # TODO(synk): on v7x, store A in fp8 (0/1 counts exact) to halve HBM bytes.

    h_pad = jnp.zeros((src_pad, in_pad), jnp.bfloat16)
    h_pad = h_pad.at[:h.shape[0], :in_c].set(h.astype(jnp.bfloat16))
    w_pad = jnp.zeros((in_pad, out_pad), jnp.bfloat16)
    w_pad = w_pad.at[:in_c, :out_c].set(w.astype(jnp.bfloat16))
    b_pad = jnp.zeros((1, out_pad), jnp.float32).at[0, :out_c].set(b)

    xw = feature_transform(h_pad, w_pad)            # (src_pad, out_pad) bf16
    out = sage_aggregate(a01, xw, inv_deg, b_pad,
                         out_valid=out_c, log_softmax=log_softmax,
                         tm=tm, tk=tk, xw_resident=xw_resident)
    return out[:dst, :out_c]


def graphsage_forward(params, x, data_flow):
    """Mirrors GraphSAGE.forward(x, data_flow) in eval mode."""
    blk0 = data_flow[0]
    h = x[blk0["n_id"]]                                      # x = x[data.n_id]
    h = sage_layer(blk0["edge_index"], blk0["size"], h,
                   params["w1"], params["b1"])               # relu(conv1(...))
    # TODO(synk): F.dropout(p=0.5, training=self.training) — identity in eval.
    blk1 = data_flow[1]
    return sage_layer(blk1["edge_index"], blk1["size"], h,
                      params["w2"], params["b2"],
                      log_softmax=True)                      # relu(conv2) + log_softmax


# --------------------------------------------------------------------------
# Pure-JAX reference (f32) for a correctness check.
# --------------------------------------------------------------------------
def _reference(params, x, data_flow):
    def layer(edge_index, size, h, w, b):
        src, dst = size
        a = jnp.zeros((dst, src), jnp.float32).at[edge_index[1],
                                                  edge_index[0]].add(1.0)
        deg = jnp.maximum(jnp.sum(a, axis=1, keepdims=True), 1.0)
        return jnp.maximum((a / deg) @ h @ w + b, 0.0)

    blk0, blk1 = data_flow
    h = layer(blk0["edge_index"], blk0["size"], x[blk0["n_id"]],
              params["w1"], params["b1"])
    h = layer(blk1["edge_index"], blk1["size"], h,
              params["w2"], params["b2"])
    return jax.nn.log_softmax(h, axis=1)


if __name__ == "__main__":
    key = jax.random.PRNGKey(0)
    N, IN_C, HID, OUT_C = 64, 32, 16, 8      # total nodes, in_ch, hidden, classes
    SRC1, DST1, DST2 = 32, 16, 8             # bipartite block sizes of the data flow
    E1, E2 = 64, 32                          # edges per block
    ks = jax.random.split(key, 8)

    x = jax.random.normal(ks[0], (N, IN_C), jnp.float32)
    n_id = jax.random.permutation(ks[1], N)[:SRC1]
    edge_index1 = jnp.stack([
        jax.random.randint(ks[2], (E1,), 0, SRC1),   # source (local) node ids
        jax.random.randint(ks[3], (E1,), 0, DST1),   # target (local) node ids
    ])
    edge_index2 = jnp.stack([
        jax.random.randint(ks[4], (E2,), 0, DST1),
        jax.random.randint(ks[5], (E2,), 0, DST2),
    ])

    # Deterministic synthetic parameters (SAGEConv lin_l weights + bias).
    params = {
        "w1": jax.random.normal(ks[6], (IN_C, HID), jnp.float32) / jnp.sqrt(IN_C),
        "b1": 0.1 * jnp.arange(HID, dtype=jnp.float32),
        "w2": jax.random.normal(ks[7], (HID, OUT_C), jnp.float32) / jnp.sqrt(HID),
        "b2": 0.05 * jnp.arange(OUT_C, dtype=jnp.float32),
    }

    data_flow = [
        {"n_id": n_id, "edge_index": edge_index1, "size": (SRC1, DST1)},
        {"edge_index": edge_index2, "size": (DST1, DST2)},
    ]

    out = graphsage_forward(params, x, data_flow)
    jax.block_until_ready(out)

    assert out.shape == (DST2, OUT_C)
    assert bool(jnp.all(jnp.isfinite(out)))
    # rows of log_softmax must exp-sum to 1
    assert bool(jnp.allclose(jnp.sum(jnp.exp(out), axis=1), 1.0, atol=1e-5))
    # bf16 MXU path vs f32 reference: loosened tolerance (precision choice)
    ref = _reference(params, x, data_flow)
    assert bool(jnp.allclose(out, ref, atol=1e-1)), float(
        jnp.max(jnp.abs(out - ref)))
    print("KERNEL_OK")
</pallas_src>

<mosaic_0001>
module attributes {stable_mosaic.version = 11 : i64} {
  func.func @_xw_kernel(%arg0: i32, %arg1: memref<128x128xbf16, #tpu.memory_space<vmem>>, %arg2: memref<128x128xbf16, #tpu.memory_space<vmem>>, %arg3: memref<128x128xbf16, #tpu.memory_space<vmem>>) attributes {dimension_semantics = [#tpu.dimension_semantics<parallel>], iteration_bounds = array<i64: 1>, scalar_prefetch = 0 : i64, scratch_operands = 0 : i64, tpu.core_type = #tpu.core_type<tc>, window_params = [{transform_indices = @transform_0, window_bounds = array<i64: 128, 128>}, {pipeline_mode = #tpu.pipeline_mode<synchronous>, transform_indices = @transform_1, window_bounds = array<i64: 128, 128>}, {transform_indices = @transform_2, window_bounds = array<i64: 128, 128>}]} {
    %c0 = arith.constant 0 : index
    %c0_0 = arith.constant 0 : index
    %0 = vector.load %arg1[%c0, %c0_0] : memref<128x128xbf16, #tpu.memory_space<vmem>>, vector<128x128xbf16>
    %c0_1 = arith.constant 0 : index
    %c0_2 = arith.constant 0 : index
    %1 = vector.load %arg2[%c0_1, %c0_2] : memref<128x128xbf16, #tpu.memory_space<vmem>>, vector<128x128xbf16>
    %cst = arith.constant dense<0.000000e+00> : vector<128x128xf32>
    %2 = tpu.matmul %0, %1, %cst {dimension_numbers = #tpu.dot_dimension_numbers<[1], [0], [0], [1], [0, 0, 1, 1], [], []>} : vector<128x128xbf16>, vector<128x128xbf16>, vector<128x128xf32> -> vector<128x128xf32>
    %3 = arith.truncf %2 : vector<128x128xf32> to vector<128x128xbf16>
    %c0_3 = arith.constant 0 : index
    %c0_4 = arith.constant 0 : index
    %4 = vector.load %arg3[%c0_3, %c0_4] : memref<128x128xbf16, #tpu.memory_space<vmem>>, vector<128x128xbf16>
    tpu.vector_store %arg3[%c0_3, %c0_4], %3 {strides = array<i32>} : memref<128x128xbf16, #tpu.memory_space<vmem>>, vector<128x128xbf16>,
    return
  }
  func.func @transform_0(%arg0: i32) -> (i32, i32) {
    %c0_i32 = arith.constant 0 : i32
    %c0_i32_0 = arith.constant 0 : i32
    return %arg0, %c0_i32 : i32, i32
  }
  func.func @transform_1(%arg0: i32) -> (i32, i32) {
    %c0_i32 = arith.constant 0 : i32
    %c0_i32_0 = arith.constant 0 : i32
    %c0_i32_1 = arith.constant 0 : i32
    return %c0_i32, %c0_i32_0 : i32, i32
  }
  func.func @transform_2(%arg0: i32) -> (i32, i32) {
    %c0_i32 = arith.constant 0 : i32
    %c0_i32_0 = arith.constant 0 : i32
    return %arg0, %c0_i32 : i32, i32
  }
}

</mosaic_0001>

<bundles_post_ra>
// kernel: tpu_custom_call.1
= control target key start
LH: loop header
LB: loop body
LE: loop exit
PB: predicated region body
PF: predicated region fallthrough
CT: control target
= control target key end

     0   :  { %7 = vsyncpa [#allocation3], 0  ;;  %s545_s0 = inlined_call_operand.hbm [shape: bf16[128,128], index: 0, kind: input, shape index: {}]   ;;  %s546_s1 = inlined_call_operand.hbm [shape: bf16[128,128], index: 1, kind: input, shape index: {}]   ;;  %s547_s2 = inlined_call_operand.hbm [shape: bf16[128,128], index: 2, kind: output, shape index: {}]  }
   0x1   :  { %8 = vsyncpa [#allocation6], 0 }
   0x2   :  { %9 = vsyncpa [#allocation4], 0  ;;  %s14_s11 = sshll.u32 %s545_s0, 4  ;;  %s507_s12 = smov [#allocation2]   ;;  %s15_s11 = int_to_ptr.hbm [resolvable:$true] %s14_s11 }
   0x3   :  { %s16_s13 = sshll.u32 %s507_s12, 4  ;;  %s27_s16 = sshll.u32 %s546_s1, 4  ;;  %s17_s13 = int_to_ptr.vmem [resolvable:$true] %s16_s13  ;;  %s28_s16 = int_to_ptr.hbm [resolvable:$true] %s27_s16 }
   0x4   :  { %s508_s17 = smov 64   ;;  %s509_s18 = smov 4  }
   0x5   :  { %22 = dma.hbm_to_vmem [thread:$0]  %s15_s11, 1024, %s17_s13, [#allocation3], %s508_s17, %s508_s17, %s509_s18  }
   0x6   :  { %s510_s19 = smov [#allocation5]  }
   0x7   :  { %s29_s20 = sshll.u32 %s510_s19, 4  ;;  %s30_s20 = int_to_ptr.vmem [resolvable:$true] %s29_s20 }
   0x8   :  { %35 = dma.hbm_to_vmem [thread:$0]  %s28_s16, 1024, %s30_s20, [#allocation6], %s508_s17, %s508_s17, %s509_s18  }
   0x9   :  { %501 = dma.done.wait [#allocation3], 1024  }
   0xa   :  { %502 = vsyncadd [#allocation3], 4294966272 }
   0xb   :  { %503 = dma.done.wait [#allocation6], 1024  }
   0xc   :  { %504 = vsyncadd [#allocation6], 4294966272  ;;  %v352_v0 = vld [vmem:[#allocation5 + $0x38] sm:$0xff]  ;;  %v351_v1 = vld [vmem:[#allocation5 + $0x30] sm:$0xff]  ;;  %s511_s0 = smov [#allocation7]   ;;  %s259_s23 = sshll.u32 %s547_s2, 4  ;;  %s260_s23 = int_to_ptr.hbm [resolvable:$true] %s259_s23 }
   0xd   :  { %172 = vmatpush.bf16.msra.mxu0 %v352_v0  ;;  %400 = vmatpush.bf16.msra.mxu1 %v352_v0  ;;  %v350_v2 = vld [vmem:[#allocation5 + $0x28] sm:$0xff]  ;;  %v349_v3 = vld [vmem:[#allocation5 + $0x20] sm:$0xff]  ;;  %v348_v4 = vld [vmem:[#allocation5 + $0x18] sm:$0xff]  ;;  %s257_s1 = sshll.u32 %s511_s0, 4  ;;  %s258_s1 = int_to_ptr.vmem [resolvable:$true] %s257_s1 }
   0xe   :  { %401 = vmatpush.bf16.msra.mxu2 %v352_v0  ;;  %402 = vmatpush.bf16.msra.mxu3 %v352_v0  ;;  %v347_v5 = vld [vmem:[#allocation5 + $0x10] sm:$0xff]  ;;  %v346_v6 = vld [vmem:[#allocation5 + $0x8] sm:$0xff]  ;;  %v345_v7 = vld [vmem:[#allocation5] sm:$0xff] }
   0xf   :  { %v337_v8 = vld [vmem:[#allocation2] sm:$0xff]  ;;  %v339_v9 = vld [vmem:[#allocation2 + $0x10] sm:$0xff]  ;;  %v338_v12 = vld [vmem:[#allocation2 + $0x8] sm:$0xff] }
  0x10   :  { %v341_v10 = vld [vmem:[#allocation2 + $0x20] sm:$0xff]  ;;  %v343_v11 = vld [vmem:[#allocation2 + $0x30] sm:$0xff]  ;;  %v340_v13 = vld [vmem:[#allocation2 + $0x18] sm:$0xff] }
  0x11   :  { %173 = vmatpush.bf16.msra.mxu0 %v351_v1  ;;  %403 = vmatpush.bf16.msra.mxu1 %v351_v1  ;;  %v342_v14 = vld [vmem:[#allocation2 + $0x28] sm:$0xff]  ;;  %v344_v15 = vld [vmem:[#allocation2 + $0x38] sm:$0xff] }
  0x12   :  { %404 = vmatpush.bf16.msra.mxu2 %v351_v1  ;;  %405 = vmatpush.bf16.msra.mxu3 %v351_v1 }
  0x15   :  { %174 = vmatpush.bf16.msra.mxu0 %v350_v2  ;;  %406 = vmatpush.bf16.msra.mxu1 %v350_v2 }
  0x16   :  { %407 = vmatpush.bf16.msra.mxu2 %v350_v2  ;;  %408 = vmatpush.bf16.msra.mxu3 %v350_v2 }
  0x19   :  { %175 = vmatpush.bf16.msra.mxu0 %v349_v3  ;;  %409 = vmatpush.bf16.msra.mxu1 %v349_v3 }
  0x1a   :  { %410 = vmatpush.bf16.msra.mxu2 %v349_v3  ;;  %411 = vmatpush.bf16.msra.mxu3 %v349_v3 }
  0x1d   :  { %176 = vmatpush.bf16.msra.mxu0 %v348_v4  ;;  %412 = vmatpush.bf16.msra.mxu1 %v348_v4 }
  0x1e   :  { %413 = vmatpush.bf16.msra.mxu2 %v348_v4  ;;  %414 = vmatpush.bf16.msra.mxu3 %v348_v4 }
  0x21   :  { %177 = vmatpush.bf16.msra.mxu0 %v347_v5  ;;  %415 = vmatpush.bf16.msra.mxu1 %v347_v5 }
  0x22   :  { %416 = vmatpush.bf16.msra.mxu2 %v347_v5  ;;  %417 = vmatpush.bf16.msra.mxu3 %v347_v5 }
  0x25   :  { %178 = vmatpush.bf16.msra.mxu0 %v346_v6  ;;  %418 = vmatpush.bf16.msra.mxu1 %v346_v6 }
  0x26   :  { %419 = vmatpush.bf16.msra.mxu2 %v346_v6  ;;  %420 = vmatpush.bf16.msra.mxu3 %v346_v6 }
  0x29   :  { %179 = vmatpush.bf16.msra.mxu0 %v345_v7  ;;  %421 = vmatpush.bf16.msra.mxu1 %v345_v7 }
  0x2a   :  { %422 = vmatpush.bf16.msra.mxu2 %v345_v7  ;;  %423 = vmatpush.bf16.msra.mxu3 %v345_v7 }
  0x2c   :  { %180 = vmatmul.bf16.vlgmr.msra.gmra.mxu0 %v337_v8  ;;  %190 = vmatmul.bf16.vlgmr.msra.gmra.mxu1 %v339_v9 }
  0x2d   :  { %200 = vmatmul.bf16.vlgmr.msra.gmra.mxu2 %v341_v10  ;;  %210 = vmatmul.bf16.vlgmr.msra.gmra.mxu3 %v343_v11 }
  0x3c   :  { %185 = vmatmul.bf16.gmra.mxu0 %v338_v12  ;;  %195 = vmatmul.bf16.gmra.mxu1 %v340_v13 }
  0x3d   :  { %205 = vmatmul.bf16.gmra.mxu2 %v342_v14  ;;  %215 = vmatmul.bf16.gmra.mxu3 %v344_v15 }
  0xa9   :  { %v181_v16 = vpop.f32.mrf.mxu0  ;;  %v191_v17 = vpop.f32.mrf.mxu1 }
  0xb0   :  { %v201_v18 = vpop.f32.mrf.mxu2  ;;  %v211_v19 = vpop.f32.mrf.mxu3 }
  0xb1   :  { %v183_v20 = vpop.f32.mrf.mxu0  ;;  %v193_v21 = vpop.f32.mrf.mxu1 }
  0xb2   :  { %v356_v22 = vpack.c.bf16 %v183_v20, %v181_v16  ;;  %v366_v23 = vpack.c.bf16 %v193_v21, %v191_v17 }
  0xb4   :  { %357 = vst [vmem:[#allocation7] sm:$0xff] %v356_v22  }
  0xb5   :  { %394 = vst [vmem:[#allocation7 + $0x10] sm:$0xff] %v366_v23  }
  0xb8   :  { %v203_v24 = vpop.f32.mrf.mxu2  ;;  %v213_v25 = vpop.f32.mrf.mxu3 }
  0xb9   :  { %v376_v26 = vpack.c.bf16 %v203_v24, %v201_v18  ;;  %v386_v27 = vpack.c.bf16 %v213_v25, %v211_v19  ;;  %v186_v28 = vpop.f32.mrf.mxu0  ;;  %v196_v29 = vpop.f32.mrf.mxu1 }
  0xbb   :  { %396 = vst [vmem:[#allocation7 + $0x20] sm:$0xff] %v376_v26  }
  0xbc   :  { %398 = vst [vmem:[#allocation7 + $0x30] sm:$0xff] %v386_v27  }
  0xc0   :  { %v206_v30 = vpop.f32.mrf.mxu2  ;;  %v216_v31 = vpop.f32.mrf.mxu3 }
  0xc1   :  { %v188_v32 = vpop.f32.mrf.mxu0  ;;  %v198_v33 = vpop.f32.mrf.mxu1 }
  0xc2   :  { %v361_v34 = vpack.c.bf16 %v188_v32, %v186_v28  ;;  %v371_v35 = vpack.c.bf16 %v198_v33, %v196_v29 }
  0xc4   :  { %393 = vst [vmem:[#allocation7 + $0x8] sm:$0xff] %v361_v34  }
  0xc5   :  { %395 = vst [vmem:[#allocation7 + $0x18] sm:$0xff] %v371_v35  }
  0xc8   :  { %v208_v36 = vpop.f32.mrf.mxu2  ;;  %v218_v37 = vpop.f32.mrf.mxu3 }
  0xc9   :  { %v381_v38 = vpack.c.bf16 %v208_v36, %v206_v30  ;;  %v391_v39 = vpack.c.bf16 %v218_v37, %v216_v31 }
  0xcb   :  { %397 = vst [vmem:[#allocation7 + $0x28] sm:$0xff] %v381_v38  }
  0xcc   :  { %399 = vst [vmem:[#allocation7 + $0x38] sm:$0xff] %v391_v39  }
  0xcd   :  { %265 = dma.vmem_to_hbm [thread:$0]  %s258_s1, 1024, %s260_s23, [#allocation4], %s508_s17, %s508_s17, %s509_s18  }
  0xce   :  { %505 = dma.done.wait [#allocation4], 1024  }
  0xcf   :  { %506 = vsyncadd [#allocation4], 4294966272 }
  0xd0   :  { %270 = vsyncpa [#allocation3], 1 }
  0xd1   :  { %271 = vsyncpa [#allocation6], 1 }
  0xd2   :  { %272 = vsyncpa [#allocation4], 1 }

</bundles_post_ra>
